<compile_context>
chip_gen: v5e
topology: v5e:2x2
jax: 0.10.0
libtpu: 0.0.40
codegen_flags: <defaults>
</compile_context>

<pallas_src>
import jax
import jax.numpy as jnp
import numpy as np
from jax import lax
from jax.experimental import pallas as pl
from jax.experimental.pallas import tpu as pltpu


def _location_layer_kernel(x_ref, w_ref, o_ref):
    # x_ref: (TM, K*C)   one row tile of the im2col'd input
    # w_ref: (K*C, A)    folded conv+dense weight (VMEM-resident across the grid)
    # o_ref: (TM, A)     output row tile
    o_ref[...] = jnp.dot(
        x_ref[...], w_ref[...], preferred_element_type=jnp.float32
    ).astype(o_ref.dtype)


def _round_up(x, m):
    return ((x + m - 1) // m) * m


def location_layer_forward(attention_weights_cat, conv_weight, dense_weight,
                           *, tile_rows=1024, min_pallas_rows=4096,
                           force_pallas=False):
    """attention_weights_cat: (B, 2, T) NCW, like the PyTorch module.
    conv_weight:  (F, 2, K)  -- torch Conv1d weight layout
    dense_weight: (A, F)     -- torch Linear weight layout
    returns (B, T, A)
    """
    B, C, T = attention_weights_cat.shape
    F_, _, K = conv_weight.shape
    A, _ = dense_weight.shape
    pad = (K - 1) // 2
    KC = K * C
    BT = B * T

    # ---- wrapper-side prep (layout plumbing + tiny weight fold, f32, in XLA) ----
    # Fold conv (F, C, K) and dense (A, F) weights into one (K*C, A) matrix.
    # NOTE: keep the fold in f32 even if activations move to bf16 (rounding parity
    # with the two-stage PyTorch reference).
    w_eff = jnp.einsum(
        "fck,af->kca",
        conv_weight.astype(jnp.float32),
        dense_weight.astype(jnp.float32),
    ).reshape(KC, A)

    # im2col: (B, 2, T) -> (B, T, C) -> 'same' pad on time -> K shifted windows
    # stacked channel-wise -> (B*T, K*C). Column order k*C + c matches w_eff rows.
    x_tlc = jnp.transpose(attention_weights_cat, (0, 2, 1))      # (B, T, C)
    x_padded = jnp.pad(x_tlc, ((0, 0), (pad, pad), (0, 0)))      # (B, T+K-1, C)
    windows = [x_padded[:, k:k + T, :] for k in range(K)]        # K x (B, T, C)
    x_g = jnp.concatenate(windows, axis=-1).reshape(BT, KC)      # (B*T, K*C)

    use_pallas = force_pallas or (BT >= min_pallas_rows)
    if not use_pallas:
        # Kernel-launch overhead dominates at tiny sizes; plain XLA matmul wins.
        out = jnp.dot(x_g, w_eff.astype(x_g.dtype),
                      preferred_element_type=jnp.float32).astype(x_g.dtype)
        return out.reshape(B, T, A)

    # Row tile: multiple of 8 sublanes, capped so double-buffered working set
    # stays small (fits easily under the v5e 16 MiB scoped-VMEM default).
    TM = min(tile_rows, _round_up(BT, 8))
    TM = _round_up(TM, 8)
    grid = (pl.cdiv(BT, TM),)

    cost = pl.CostEstimate(
        flops=2 * BT * KC * A,
        transcendentals=0,
        bytes_accessed=(BT * KC + KC * A + BT * A) * 4,
    )

    out = pl.pallas_call(
        _location_layer_kernel,
        out_shape=jax.ShapeDtypeStruct((BT, A), attention_weights_cat.dtype),
        grid_spec=pl.GridSpec(
            grid=grid,
            in_specs=[
                # Row tiles of the im2col'd input (pipelined / double-buffered).
                pl.BlockSpec((TM, KC), lambda i: (i, 0)),
                # Folded weight: constant block index -> stays VMEM resident.
                pl.BlockSpec((KC, A), lambda i: (0, 0)),
            ],
            # No lane pad: last dim == full array dim (masked vst when A < 128).
            out_specs=pl.BlockSpec((TM, A), lambda i: (i, 0)),
        ),
        compiler_params=pltpu.CompilerParams(
            # Independent row tiles: shard across both TensorCores on v7x.
            dimension_semantics=("parallel",),
        ),
        cost_estimate=cost,
    )(w_eff.astype(attention_weights_cat.dtype) if False else x_g, w_eff) \
        if False else pl.pallas_call(
        _location_layer_kernel,
        out_shape=jax.ShapeDtypeStruct((BT, A), attention_weights_cat.dtype),
        grid_spec=pl.GridSpec(
            grid=grid,
            in_specs=[
                pl.BlockSpec((TM, KC), lambda i: (i, 0)),
                pl.BlockSpec((KC, A), lambda i: (0, 0)),
            ],
            out_specs=pl.BlockSpec((TM, A), lambda i: (i, 0)),
        ),
        compiler_params=pltpu.CompilerParams(
            dimension_semantics=("parallel",),
        ),
        cost_estimate=cost,
    )(x_g, w_eff)

    # No padding was added, so no slice needed: just restore (B, T, A).
    return out.reshape(B, T, A)


def _xavier_uniform(key, shape, fan_in, fan_out, gain):
    bound = gain * np.sqrt(6.0 / (fan_in + fan_out))
    return jax.random.uniform(key, shape, jnp.float32, -bound, bound)


def _reference_forward(x, conv_weight, dense_weight):
    # Pure-JAX reference (conv1d NCW + linear), for correctness check.
    y = lax.conv_general_dilated(
        x, conv_weight,
        window_strides=(1,),
        padding=[((conv_weight.shape[-1] - 1) // 2,) * 2],
        dimension_numbers=("NCH", "OIH", "NCH"),
    )                                   # (B, F, T)
    y = jnp.transpose(y, (0, 2, 1))     # (B, T, F)
    return jnp.einsum("btf,af->bta", y, dense_weight)


if __name__ == "__main__":
    # Module hyperparameters (small, consistent with LocationLayer.__init__).
    attention_n_filters = 8     # F
    attention_kernel_size = 5   # K (odd, as asserted by ConvNorm)
    attention_dim = 32          # A
    B, T = 2, 20                # B*T = 40 -> with tile_rows=16: 3 tiles, last partial

    key = jax.random.PRNGKey(0)
    k_conv, k_dense, k_x = jax.random.split(key, 3)

    # Conv1d weight (F, 2, K), xavier_uniform with gain('linear') = 1.0
    conv_weight = _xavier_uniform(
        k_conv, (attention_n_filters, 2, attention_kernel_size),
        fan_in=2 * attention_kernel_size,
        fan_out=attention_n_filters * attention_kernel_size,
        gain=1.0,
    )
    # Linear weight (A, F), xavier_uniform with gain('tanh') = 5/3
    dense_weight = _xavier_uniform(
        k_dense, (attention_dim, attention_n_filters),
        fan_in=attention_n_filters,
        fan_out=attention_dim,
        gain=5.0 / 3.0,
    )

    # attention_weights_cat: (B, 2, T)
    attention_weights_cat = jax.random.normal(k_x, (B, 2, T), jnp.float32)

    # Small tile_rows so the demo exercises the multi-step pipelined grid and the
    # partial (masked) last block; production uses the default tile_rows=1024.
    out = location_layer_forward(attention_weights_cat, conv_weight, dense_weight,
                                 tile_rows=16, force_pallas=True)
    out = jax.block_until_ready(out)

    ref = _reference_forward(attention_weights_cat, conv_weight, dense_weight)
    np.testing.assert_allclose(np.asarray(out), np.asarray(ref),
                               rtol=1e-5, atol=1e-5)

    print("KERNEL_OK")
</pallas_src>

<mosaic_0001>
module attributes {stable_mosaic.version = 11 : i64} {
  func.func @_location_layer_kernel(%arg0: i32, %arg1: memref<16x10xf32, #tpu.memory_space<vmem>>, %arg2: memref<10x32xf32, #tpu.memory_space<vmem>>, %arg3: memref<16x32xf32, #tpu.memory_space<vmem>>) attributes {dimension_semantics = [#tpu.dimension_semantics<parallel>], iteration_bounds = array<i64: 3>, scalar_prefetch = 0 : i64, scratch_operands = 0 : i64, tpu.core_type = #tpu.core_type<tc>, window_params = [{transform_indices = @transform_0, window_bounds = array<i64: 16, 10>}, {pipeline_mode = #tpu.pipeline_mode<synchronous>, transform_indices = @transform_1, window_bounds = array<i64: 10, 32>}, {transform_indices = @transform_2, window_bounds = array<i64: 16, 32>}]} {
    %c0 = arith.constant 0 : index
    %c0_0 = arith.constant 0 : index
    %0 = vector.load %arg1[%c0, %c0_0] : memref<16x10xf32, #tpu.memory_space<vmem>>, vector<16x10xf32>
    %c0_1 = arith.constant 0 : index
    %c0_2 = arith.constant 0 : index
    %1 = vector.load %arg2[%c0_1, %c0_2] : memref<10x32xf32, #tpu.memory_space<vmem>>, vector<10x32xf32>
    %cst = arith.constant dense<0.000000e+00> : vector<16x32xf32>
    %2 = tpu.matmul %0, %1, %cst {dimension_numbers = #tpu.dot_dimension_numbers<[1], [0], [0], [1], [0, 0, 1, 1], [], []>} : vector<16x10xf32>, vector<10x32xf32>, vector<16x32xf32> -> vector<16x32xf32>
    %c0_3 = arith.constant 0 : index
    %c0_4 = arith.constant 0 : index
    %3 = vector.load %arg3[%c0_3, %c0_4] : memref<16x32xf32, #tpu.memory_space<vmem>>, vector<16x32xf32>
    tpu.vector_store %arg3[%c0_3, %c0_4], %2 {strides = array<i32>} : memref<16x32xf32, #tpu.memory_space<vmem>>, vector<16x32xf32>,
    return
  }
  func.func @transform_0(%arg0: i32) -> (i32, i32) {
    %c0_i32 = arith.constant 0 : i32
    %c0_i32_0 = arith.constant 0 : i32
    return %arg0, %c0_i32 : i32, i32
  }
  func.func @transform_1(%arg0: i32) -> (i32, i32) {
    %c0_i32 = arith.constant 0 : i32
    %c0_i32_0 = arith.constant 0 : i32
    %c0_i32_1 = arith.constant 0 : i32
    return %c0_i32, %c0_i32_0 : i32, i32
  }
  func.func @transform_2(%arg0: i32) -> (i32, i32) {
    %c0_i32 = arith.constant 0 : i32
    %c0_i32_0 = arith.constant 0 : i32
    return %arg0, %c0_i32 : i32, i32
  }
}

</mosaic_0001>

<bundles_post_ra>
// kernel: tpu_custom_call.1
= control target key start
LH: loop header
LB: loop body
LE: loop exit
PB: predicated region body
PF: predicated region fallthrough
CT: control target
= control target key end

     0   :  { %s649_s9 = smov 0   ;;  %s651_s10 = smov 0   ;;  %s733_s0 = inlined_call_operand.vmem [shape: f32[40,10], index: 0, kind: input, shape index: {}]   ;;  %s734_s1 = inlined_call_operand.vmem [shape: f32[10,32], index: 1, kind: input, shape index: {}]   ;;  %s735_s2 = inlined_call_operand.vmem [shape: f32[40,32], index: 2, kind: output, shape index: {}]  }
   0x1   :  { %s653_s11 = smov 0  }
   0x2 LB: > { %s662_s12 = sadd.s32 4294967295, %s600_s11   ;;  %s664_s13 = sadd.s32 1, %s600_s11   ;;  %s600_s11 = sphi %s653_s11, %s739_s11   ;;  %s596_s10 = sphi %s651_s10, %s738_s10   ;;  %s592_s9 = sphi %s649_s9, %s737_s9  }
   0x3   : > { %s63_s14 = ssub.s32 %s600_s11, %s664_s13  ;;  %s66_s15 = sadd.s32 1, %s596_s10 }
   0x4   : > { %p64_p0 = scmp.eq.s32.totalorder %s63_s14, 0  ;;  %p76_p1 = scmp.ne.s32.totalorder %s596_s10, %s592_s9 }
   0x5   : > { %p77_p2 = scmp.eq.s32.totalorder %s662_s12, 2  ;;  %p429_p3 = scmp.ge.s32.totalorder %s600_s11, 1 }
   0x6   : > { %s672_s16 = scalar_select %p64_p0, %s596_s10, %s66_s15  }
   0x7   : > { %p674_p4 = por %p77_p2, %p76_p1  ;;  %p121_p5 = scmp.lt.s32.totalorder %s600_s11, 4 }
   0x9   : > { %p122_p6 = pnand %p429_p3, %p121_p5 }
   0xa   : > { %s431_s22 = sshll.u32 (!%p122_p6), %s662_s12, 1  ;;  %s143_s28 = sand.u32 (!%p122_p6), 1, %s592_s9  }
   0xb   : > { %125 = sbr.rel (%p122_p6) target bundleno = 188 (0xbc), region = 28  ;;  %p151_p7 = scmp.lt.s32.totalorder (!%p122_p6), %s431_s22, 4 }
   0xc   : > { %s430_s29 = sshll.u32 (!%p122_p6), %s143_s28, 4 }
   0xd   : > { %s689_s30 = scalar_lea.vmem (!%p122_p6), [#allocation2], %s430_s29  }
  0x10   : > { %v168_v0 = vld [vmem:[%s734_s1 + $0x8] sm:$0x3]  ;;  %vm176_vm0 = vcmask 1041408   ;;  %v167_v1 = vld [vmem:[%s734_s1] sm:$0xff]  ;;  %s152_s23 = scalar_select %p151_p7, %s431_s22, 4  ;;  %vm169_vm1 = vcmask 80896  }
  0x11   : > { %433 = vmatpush.msk.msra.mxu0 %vm176_vm0, %v168_v0  ;;  %456 = vmatpush.msk.msra.mxu1 %vm176_vm0, %v168_v0  ;;  %vm203_vm2 = vcmask 261120   ;;  %s214_s3 = ssub.s32 (%p674_p4), 5, %s431_s22  ;;  %s453_s4 = sshll.u32 (%p674_p4), %s662_s12, 4 }
  0x12   : > { %s432_s24 = sshll.u32 %s152_s23, 3  ;;  %p215_p8 = scmp.lt.s32.totalorder (%p674_p4), %s214_s3, 2 }
  0x13   : > { %195 = vmatpush.msra.mxu0 %v167_v1  ;;  %457 = vmatpush.msra.mxu1 %v167_v1  ;;  %s154_s27 = scalar_lea.vmem %s733_s0, %s432_s24  ;;  %s699_s7 = scalar_lea.vmem (%p674_p4), %s735_s2, %s453_s4  }
  0x14   : > { %v165_v2 = vld [vmem:[%s154_s27] sm:$0xff]  ;;  %v166_v3 = vld [vmem:[%s154_s27 + $0x8] sm:$0xff] }
  0x15   : > { %434 = vmatmul.msk.f32.vlgmr.msra.gmra.mxu0 %vm169_vm1, %v165_v2  ;;  %435 = vmatmul.msk.f32.vlgmr.msra.gmra.mxu1 %vm169_vm1, %v166_v3 }
  0x90   : > { %212 = sbr.rel (!%p674_p4) target bundleno = 188 (0xbc), region = 32 }
  0x92   : > { %v197_v4 = vpop.f32.mrf.mxu0  ;;  %v200_v5 = vpop.f32.mrf.mxu1 }
  0x93   : > { %204 = vst.msk [vmem:[%s689_s30] sm:$0xff] %vm203_vm2, %v197_v4 }
  0x94   : > { %205 = vst.msk [vmem:[%s689_s30 + $0x8] sm:$0xff] %vm203_vm2, %v200_v5 }
  0x95   : > { %s741_s3 = smov (!%p215_p8, %s214_s3), 2 }
  0x96   : > { %s438_s8 = sshll.u32 %s741_s3, 3 }
  0x97   : > { %p441_p9 = scmp.eq.s32.totalorder %s438_s8, 0 }
  0x98   : > { %s705_s9 = sshrl.u32 (!%p441_p9), %s741_s3, 1 }
  0x99   : > { %223 = sbr.rel (%p441_p9) target bundleno = 188 (0xbc), region = 36  ;;  %p442_p10 = scmp.le.s32.totalorder (!%p441_p9), %s705_s9, 0 }
  0x9e   : > { %382 = sbr.rel (%p442_p10) target bundleno = 171 (0xab), region = 112  ;;  %s602_s11 = smov (!%p442_p10), %s699_s7  }
  0x9f   : > { %s606_s12 = smov (!%p442_p10), %s689_s30   ;;  %s610_s14 = smov (!%p442_p10), 0  }
  0xa0   : > { %s614_s15 = smov (!%p442_p10), 0  }
  0xa3 LB: >> { %v288_v6 = vld [vmem:[%s608_s12] sm:$0xff]  ;;  %v290_v7 = vld [vmem:[%s608_s12 + $0x8] sm:$0xff]  ;;  %s292_s17 = sadd.s32 1, %s612_s14  ;;  %s282_s15 = sadd.s32 1, %s616_s15   ;;  %s616_s15 = sphi %s614_s15, %s282_s15   ;;  %s612_s14 = sphi %s610_s14, %s611_s14   ;;  %s608_s12 = sphi %s606_s12, %s297_s12   ;;  %s604_s11 = sphi %s602_s11, %s298_s11  }
  0xa4   : >> { %289 = vst [vmem:[%s604_s11] sm:$0xff] %v288_v6  ;;  %p293_p11 = scmp.ge.s32.totalorder %s292_s17, %s705_s9  ;;  %p281_p12 = scmp.ge.s32.totalorder %s282_s15, %s705_s9 }
  0xa5   : >> { %291 = vst [vmem:[%s604_s11 + $0x8] sm:$0xff] %v290_v7 }
  0xa6   : >> { %s743_s17 = smov (%p293_p11, %s292_s17), 0  ;;  %284 = sbr.rel (!%p281_p12) target bundleno = 163 (0xa3), region = 118 }
  0xa7   : >> { %s443_s18 = sshll.u32 %s743_s17, 4  ;;  %s611_s14 = smov %s743_s17  }
  0xa8   : >> { %s297_s12 = scalar_lea.vmem %s689_s30, %s443_s18 [#allocation2]   ;;  %s298_s11 = scalar_lea.vmem %s699_s7, %s443_s18  }
  0xab PF: > { %s715_s19 = sand.u32 1, %s741_s3   ;;  %s454_s20 = sshll.u32 %s705_s9, 4 }
  0xac   : > { %s303_s21 = scalar_lea.vmem %s689_s30, %s454_s20 [#allocation2]   ;;  %s305_s22 = scalar_lea.vmem %s699_s7, %s454_s20  }
  0xad   : > { %p448_p13 = scmp.le.s32.totalorder %s715_s19, 0 }
  0xae   : > { %s618_s23 = smov (!%p448_p13), %s305_s22   ;;  %s622_s24 = smov (!%p448_p13), %s303_s21  }
  0xaf   : > { %396 = sbr.rel (%p448_p13) target bundleno = 188 (0xbc), region = 123  ;;  %s626_s25 = smov (!%p448_p13), 0  }
  0xb0   : > { %s630_s26 = smov (!%p448_p13), 0  }
  0xb4 LB: >> { %v315_v8 = vld [vmem:[%s624_s24] sm:$0xff]  ;;  %s317_s27 = sadd.s32 1, %s628_s25  ;;  %s309_s26 = sadd.s32 1, %s632_s26   ;;  %s632_s26 = sphi %s630_s26, %s309_s26   ;;  %s628_s25 = sphi %s626_s25, %s627_s25   ;;  %s624_s24 = sphi %s622_s24, %s322_s24   ;;  %s620_s23 = sphi %s618_s23, %s323_s23  }
  0xb5   : >> { %316 = vst [vmem:[%s620_s23] sm:$0xff] %v315_v8  ;;  %p318_p0 = scmp.ge.s32.totalorder %s317_s27, %s715_s19  ;;  %p308_p1 = scmp.ge.s32.totalorder %s309_s26, %s715_s19 }
  0xb7   : >> { %s745_s27 = smov (%p318_p0, %s317_s27), 0  ;;  %311 = sbr.rel (!%p308_p1) target bundleno = 180 (0xb4), region = 129 }
  0xb8   : >> { %s449_s28 = sshll.u32 %s745_s27, 3  ;;  %s627_s25 = smov %s745_s27  }
  0xb9   : >> { %s322_s24 = scalar_lea.vmem %s303_s21, %s449_s28 [#allocation2]   ;;  %s323_s23 = scalar_lea.vmem %s305_s22, %s449_s28  }
  0xbc PF: > { %p9_p2 = scmp.ge.s32.totalorder %s664_s13, 5   ;;  %s737_s9 = smov %s596_s10 }
  0xbd   : > { %s738_s10 = smov %s672_s16  ;;  %s739_s11 = smov %s664_s13 }
  0xbe   :  { %11 = sbr.rel (!%p9_p2) target bundleno = 2 (0x2), region = 140 }

</bundles_post_ra>
